<compile_context>
chip_gen: v6e
topology: v6e:2x2x1
jax: 0.10.0
libtpu: 0.0.40
codegen_flags: <defaults>
</compile_context>

<pallas_src>
import math

import jax
import jax.numpy as jnp
from jax.experimental import pallas as pl
from jax.experimental.pallas import tpu as pltpu

MAX_SEQ_LENGTH = 16


def create_encoding(d_model: int, max_seq_length: int = MAX_SEQ_LENGTH) -> jnp.ndarray:
    """Sinusoidal positional encoding, shape (1, max_seq_length, d_model), float32."""
    position = jnp.arange(0, max_seq_length, dtype=jnp.float32)[:, None]       # (L, 1)
    div_term = jnp.exp(
        jnp.arange(0, d_model, 2, dtype=jnp.float32) * (-math.log(10000.0) / d_model)
    )                                                                           # (ceil(D/2),)
    angles = position * div_term                                                # (L, ceil(D/2))
    encoding = jnp.zeros((max_seq_length, d_model), dtype=jnp.float32)
    encoding = encoding.at[:, 0::2].set(jnp.sin(angles))
    # Robust for odd d_model: cos only fills floor(D/2) columns.
    encoding = encoding.at[:, 1::2].set(jnp.cos(angles)[:, : d_model // 2])
    return encoding[None, :, :]                                                 # (1, L, D)


def _pos_enc_kernel(x_ref, enc_ref, o_ref):
    # Pure elementwise add: enc (1, tr, 128) f32 broadcasts over x (bpb, tr, 128);
    # add happens in the promoted (f32) dtype, result cast to the output dtype.
    o_ref[...] = (x_ref[...] + enc_ref[...]).astype(o_ref.dtype)


def _largest_divisor_le(n: int, cap: int) -> int:
    cap = max(1, min(n, cap))
    for d in range(cap, 0, -1):
        if n % d == 0:
            return d
    return 1


def positional_encoding(x: jnp.ndarray, encoding: jnp.ndarray, *,
                        target_block_bytes: int = 1 << 20):
    """x: (B, S, D); encoding: (1, max_seq_length, D) float32. Returns x + enc[:, :S, :]."""
    B, S, D = x.shape
    max_len = encoding.shape[1]
    if S > max_len:
        raise ValueError(f"seq_len={S} exceeds max_seq_length={max_len}")
    if encoding.shape[2] != D:
        raise ValueError(f"d_model mismatch: x has {D}, encoding has {encoding.shape[2]}")

    itemsize = jnp.dtype(x.dtype).itemsize
    lane = 128
    row_align = max(8, 32 // itemsize)        # sublane alignment: 8 f32 / 16 bf16 / 32 int8

    L = S * D                                  # elements per batch item
    r_min = pl.cdiv(L, lane)                   # minimum 128-wide rows per batch item

    # Per-buffer row budget (rounded to sublane alignment).
    target_rows = max(row_align,
                      (max(1, target_block_bytes // (lane * itemsize)) // row_align) * row_align)

    if r_min <= target_rows:
        # Whole per-batch table fits in one resident block.
        n_chunks, tr = 1, r_min
    else:
        # Chunk the table; pad rows up to tr * n_chunks (waste < n_chunks*row_align rows).
        n_chunks = pl.cdiv(r_min, target_rows)
        tr = row_align * pl.cdiv(pl.cdiv(r_min, n_chunks), row_align)
    rows = tr * n_chunks                       # padded rows per batch item
    L_pad = rows * lane

    # Batch elements per block: fill the byte budget, but keep >= ~8 grid steps
    # (v7x megacore load balance) unless that would shrink blocks below ~256 KiB.
    if n_chunks == 1:
        desired_steps = 8
        min_split_rows = 512
        bpb_budget = max(1, target_rows // rows)
        bpb_steps = max(1, B // min(B, desired_steps))
        if bpb_steps * rows < min_split_rows:
            bpb_steps = min(B, pl.cdiv(min_split_rows, rows))
        bpb = _largest_divisor_le(B, min(bpb_budget, bpb_steps))
    else:
        bpb = 1

    # ---- wrapper glue: lane-dense flatten (tail pad only when actually needed) ----
    x_flat = x.reshape(B, L)
    enc_flat = encoding[0, :S, :].astype(jnp.float32).reshape(L)
    if L_pad != L:
        x_flat = jnp.pad(x_flat, ((0, 0), (0, L_pad - L)))
        enc_flat = jnp.pad(enc_flat, (0, L_pad - L))
    x3 = x_flat.reshape(B, rows, lane)
    enc3 = enc_flat.reshape(1, rows, lane)

    # Chunk-major grid: inner (batch) axis keeps the enc block index constant, so the
    # pipeline re-fetches each enc chunk only when the chunk index changes.
    grid = (n_chunks, B // bpb)

    out3 = pl.pallas_call(
        _pos_enc_kernel,
        out_shape=jax.ShapeDtypeStruct((B, rows, lane), x.dtype),
        grid=grid,
        in_specs=[
            pl.BlockSpec((bpb, tr, lane), lambda r, b: (b, r, 0)),   # streaming x tiles
            pl.BlockSpec((1, tr, lane), lambda r, b: (0, r, 0)),     # enc: chunk-indexed, batch-invariant
        ],
        out_specs=pl.BlockSpec((bpb, tr, lane), lambda r, b: (b, r, 0)),
        compiler_params=pltpu.CompilerParams(
            dimension_semantics=("parallel", "parallel"),
        ),
    )(x3, enc3)

    out = out3.reshape(B, L_pad)
    if L_pad != L:
        out = out[:, :L]
    return out.reshape(B, S, D)


if __name__ == "__main__":
    batch, seq, d_model = 2, 8, 32

    key = jax.random.PRNGKey(0)
    x = jax.random.normal(key, (batch, seq, d_model), dtype=jnp.float32)

    encoding = create_encoding(d_model, MAX_SEQ_LENGTH)

    # Pure-JAX reference.
    ref = x + encoding[:, :seq, :]

    fn = jax.jit(positional_encoding)
    out = jax.block_until_ready(fn(x, encoding))

    assert out.shape == (batch, seq, d_model)
    assert jnp.allclose(out, ref, atol=1e-6), "mismatch vs reference"

    print("KERNEL_OK")
</pallas_src>

<mosaic_0001>
module attributes {stable_mosaic.version = 11 : i64} {
  func.func @_pos_enc_kernel(%arg0: i32, %arg1: i32, %arg2: memref<2x2x128xf32, #tpu.memory_space<vmem>>, %arg3: memref<1x2x128xf32, #tpu.memory_space<vmem>>, %arg4: memref<2x2x128xf32, #tpu.memory_space<vmem>>) attributes {dimension_semantics = [#tpu.dimension_semantics<parallel>, #tpu.dimension_semantics<parallel>], iteration_bounds = array<i64: 1, 1>, scalar_prefetch = 0 : i64, scratch_operands = 0 : i64, tpu.core_type = #tpu.core_type<tc>, window_params = [{transform_indices = @transform_0, window_bounds = array<i64: 2, 2, 128>}, {transform_indices = @transform_1, window_bounds = array<i64: 1, 2, 128>}, {transform_indices = @transform_2, window_bounds = array<i64: 2, 2, 128>}]} {
    %c0 = arith.constant 0 : index
    %c0_0 = arith.constant 0 : index
    %c0_1 = arith.constant 0 : index
    %0 = vector.load %arg2[%c0, %c0_0, %c0_1] : memref<2x2x128xf32, #tpu.memory_space<vmem>>, vector<2x2x128xf32>
    %c0_2 = arith.constant 0 : index
    %c0_3 = arith.constant 0 : index
    %c0_4 = arith.constant 0 : index
    %1 = vector.load %arg3[%c0_2, %c0_3, %c0_4] : memref<1x2x128xf32, #tpu.memory_space<vmem>>, vector<1x2x128xf32>
    %2 = vector.broadcast %1 : vector<1x2x128xf32> to vector<2x2x128xf32>
    %3 = arith.addf %0, %2 : vector<2x2x128xf32>
    %c0_5 = arith.constant 0 : index
    %c0_6 = arith.constant 0 : index
    %c0_7 = arith.constant 0 : index
    %4 = vector.load %arg4[%c0_5, %c0_6, %c0_7] : memref<2x2x128xf32, #tpu.memory_space<vmem>>, vector<2x2x128xf32>
    tpu.vector_store %arg4[%c0_5, %c0_6, %c0_7], %3 {strides = array<i32>} : memref<2x2x128xf32, #tpu.memory_space<vmem>>, vector<2x2x128xf32>,
    return
  }
  func.func @transform_0(%arg0: i32, %arg1: i32) -> (i32, i32, i32) {
    %c0_i32 = arith.constant 0 : i32
    %c0_i32_0 = arith.constant 0 : i32
    return %arg1, %arg0, %c0_i32 : i32, i32, i32
  }
  func.func @transform_1(%arg0: i32, %arg1: i32) -> (i32, i32, i32) {
    %c0_i32 = arith.constant 0 : i32
    %c0_i32_0 = arith.constant 0 : i32
    %c0_i32_1 = arith.constant 0 : i32
    return %c0_i32, %arg0, %c0_i32_0 : i32, i32, i32
  }
  func.func @transform_2(%arg0: i32, %arg1: i32) -> (i32, i32, i32) {
    %c0_i32 = arith.constant 0 : i32
    %c0_i32_0 = arith.constant 0 : i32
    return %arg1, %arg0, %c0_i32 : i32, i32, i32
  }
}

</mosaic_0001>

<bundles_post_ra>
// kernel: squeeze.1
= control target key start
LH: loop header
LB: loop body
LE: loop exit
PB: predicated region body
PF: predicated region fallthrough
CT: control target
= control target key end

     0   :  { %s7_s6 = smov 3  ;;  %s14_s9 = smov 3  ;;  %vm4_vm0 = vcmask 261120   ;;  %vm11_vm1 = vcmask 1048320   ;;  %vm18_vm2 = vcmask 785920   ;;  %vm25_vm3 = vcmask 523520   ;;  %s69_s0 = inlined_call_operand.vmem [shape: f32[1,8,32], index: 0, kind: input, shape index: {}]   ;;  %s70_s1 = inlined_call_operand.vmem [shape: f32[1,2,128], index: 1, kind: output, shape index: {}]  }
   0x1   :  { %v35_v0 = vld [vmem:[%s69_s0 + $0x3] ss:$4 sm:%s7_s6]   ;;  %s41_s10 = smov 96   ;;  %s21_s11 = smov 3  ;;  %v36_v1 = vld [vmem:[%s69_s0 + $0x2] ss:$4 sm:%s14_s9]  }
   0x2   :  { %9 = vrot.lane.b32.xlu0 %v35_v0, %s41_s10  ;;  %v37_v2 = vld [vmem:[%s69_s0 + $0x1] ss:$4 sm:%s21_s11]   ;;  %s2_s16 = smov 3  ;;  %s42_s17 = smov 32  }
   0x3   :  { %23 = vrot.lane.b32.xlu1 %v37_v2, %s42_s17  ;;  %v3_v3 = vld [vmem:[%s69_s0] ss:$4 sm:%s2_s16]   ;;  %s43_s0 = smov 64  }
   0x4   :  { %5 = vst.msk [vmem:[#allocation0] sm:$0x3] %vm4_vm0, %v3_v3  }
   0x6   :  { %16 = vrot.lane.b32.xlu0 %v36_v1, %s43_s0 }
  0x74   :  { %v10_v4 = vpop.permute.xlu0 %9  }
  0x75   :  { %12 = vst.msk [vmem:[#allocation0] sm:$0x3] %vm11_vm1, %v10_v4   ;;  %v24_v5 = vpop.permute.xlu1 %23  }
  0x78   :  { %v17_v6 = vpop.permute.xlu0 %16  }
  0x79   :  { %19 = vst.msk [vmem:[#allocation0] sm:$0x3] %vm18_vm2, %v17_v6  }
  0x7a   :  { %26 = vst.msk [vmem:[#allocation0] sm:$0x3] %vm25_vm3, %v24_v5  }
  0x81   :  { %v31_v7 = vld [vmem:[#allocation0] sm:$0x3] }
  0x82   :  { %34 = vst [vmem:[%s70_s1] sm:$0x3] %v31_v7 }

// kernel: positional_encoding.1
= control target key start
LH: loop header
LB: loop body
LE: loop exit
PB: predicated region body
PF: predicated region fallthrough
CT: control target
= control target key end

     0   :  { %s52_s0 = inlined_call_operand.vmem [shape: f32[2,2,128], index: 0, kind: input, shape index: {}]   ;;  %s53_s1 = inlined_call_operand.vmem [shape: f32[1,2,128], index: 1, kind: input, shape index: {}]   ;;  %s54_s2 = inlined_call_operand.vmem [shape: f32[2,2,128], index: 2, kind: output, shape index: {}]  }
   0x1   :  { %v11_v0 = vld [vmem:[%s52_s0] sm:$0x3]  ;;  %v12_v2 = vld [vmem:[%s52_s0 + $0x2] sm:$0x3] }
   0x2   :  { %v13_v1 = vld [vmem:[%s53_s1] sm:$0x3] }
   0x3   :  { %v14_v3 = vadd.f32 %v13_v1, %v11_v0  ;;  %v15_v4 = vadd.f32 %v13_v1, %v12_v2 }
   0x5   :  { %16 = vst [vmem:[%s54_s2] sm:$0x3] %v14_v3  ;;  %17 = vst [vmem:[%s54_s2 + $0x2] sm:$0x3] %v15_v4 }

</bundles_post_ra>
